<compile_context>
chip_gen: v6e
topology: v6e:2x2x1
jax: 0.10.0
libtpu: 0.0.40
codegen_flags: <defaults>
</compile_context>

<pallas_src>
import functools

import jax
import jax.numpy as jnp
from jax.experimental import pallas as pl
from jax.experimental.pallas import tpu as pltpu


def _round_up(x, m):
    return (x + m - 1) // m * m


def _emulate_f16_roundtrip(x):
    """x.astype(float16).astype(float32) (round-to-nearest-even), emulated with
    f32/int32 ops so it lowers on every TPU generation."""
    ax = jnp.abs(x)
    mag = pltpu.bitcast(ax, jnp.int32)                        # >= 0

    # Normal fp16 range: RTNE the f32 mantissa down to 10 bits.  Mantissa carries
    # into the exponent are handled naturally by the integer add.
    rnd = mag + jnp.int32(0x0FFF) + ((mag >> 13) & jnp.int32(1))
    rnd = (rnd >> 13) << 13
    y_norm = pltpu.bitcast(rnd, jnp.float32)
    # Anything that rounds to >= 65536 overflows fp16 -> inf.
    y_norm = jnp.where(rnd >= jnp.int32(0x47800000), jnp.float32(jnp.inf), y_norm)
    y_norm = jnp.where(x < 0, -y_norm, y_norm)

    # fp16-subnormal range (|x| < 2^-14): quantum is 2^-24; RTNE via the magic-add trick.
    magic = jnp.float32(12582912.0)                           # 1.5 * 2^23
    y_sub = ((x * jnp.float32(16777216.0) + magic) - magic) * jnp.float32(
        5.9604644775390625e-08)                               # 2^-24

    out = jnp.where(ax < jnp.float32(6.103515625e-05), y_sub, y_norm)   # 2^-14
    out = jnp.where(jnp.isnan(x), x, out)
    return out


# ------------------------------ fused kernel -------------------------------- #

def _fused_mrconv_kernel(x_ref, nbr_ref, w_ref, b_ref, out_ref, *,
                         k_neighbors, use_bf16_matmul, native_f16):
    """One node tile: max-relative aggregation over K pre-gathered neighbors,
    fp16 quantize, fused [x|agg] 1x1 conv + bias + ReLU.

    x_ref:   (TM, Cp)        f32  node features for this tile
    nbr_ref: (K, TM, Cp)     f32  pre-gathered neighbor features (k-slab contiguous)
    w_ref:   (2*Cp, Coutp)   f32/bf16  packed conv weight ([:Cp]->x rows, [Cp:]->agg rows)
    b_ref:   (1, Coutp)      f32  bias
    out_ref: (TM, Coutp)     f32
    """
    x = x_ref[...]                                            # (TM, Cp)

    # Max-relative aggregation: max_k (x_nbr_k - x).  K is small & static -> unroll.
    agg = nbr_ref[0] - x
    for k in range(1, k_neighbors):
        agg = jnp.maximum(agg, nbr_ref[k] - x)

    # torch: scatter_max(...).to(torch.float16) before the conv -> fold the round trip
    # into the kernel (no HBM traffic for it).
    if native_f16:
        agg = agg.astype(jnp.float16).astype(jnp.float32)     # v6e/v7x fast path
    else:
        agg = _emulate_f16_roundtrip(agg)                     # portable fallback

    # feat = interleave(x, agg); with the weight rows pre-permuted into [W_x ; W_agg]
    # this is a single 2*Cp-deep matmul on the [x | agg] concat (fills 256-deep MXU).
    if use_bf16_matmul:
        lhs = jnp.concatenate(
            [x.astype(jnp.bfloat16), agg.astype(jnp.bfloat16)], axis=-1)
    else:
        lhs = jnp.concatenate([x, agg], axis=-1)

    y = jnp.dot(lhs, w_ref[...], preferred_element_type=jnp.float32) + b_ref[...]
    out_ref[...] = jnp.maximum(y, 0.0).astype(out_ref.dtype)  # ReLU epilogue in f32


# ------------------------------ JAX wrappers -------------------------------- #

def graph_conv2d_nodes(x_nodes, nbr_idx, weight, bias, *, node_tile=256,
                       use_bf16_matmul=True, native_f16=False):
    """Fused MRConv2d on node-major features.

    x_nodes: (num_nodes, C) f32, node index = b*N + n
    nbr_idx: (num_nodes, K) int32 source-node indices per destination node
    weight:  (Cout, 2C) f32  (Conv2d 1x1 weight), bias: (Cout,) f32
    returns: (num_nodes, Cout) f32
    """
    num_nodes, C = x_nodes.shape
    K = nbr_idx.shape[1]
    Cout = weight.shape[0]
    assert K >= 1

    # Geometry: lane-dense channel dims (multiples of 128); node tiles in multiples
    # of 16 sublanes (safe for the packed-bf16 matmul operands too).
    TM = _round_up(min(node_tile, _round_up(num_nodes, 16)), 16)
    NNp = _round_up(num_nodes, TM)
    Cp = _round_up(C, 128)
    Coutp = _round_up(Cout, 128)
    num_tiles = NNp // TM

    f32 = jnp.float32
    x_pad = jnp.zeros((NNp, Cp), f32).at[:num_nodes, :C].set(x_nodes.astype(f32))

    # Linear-cost neighbor gather (replaces the old quadratic one-hot matmul):
    # one XLA gather, laid out (K, NNp, Cp) so each k-slab is a contiguous,
    # lane-dense (TM, Cp) block for the kernel pipeline.
    nbr = jnp.zeros((K, NNp), jnp.int32).at[:, :num_nodes].set(
        nbr_idx.astype(jnp.int32).T)
    nbr_feat = jnp.take(x_pad, nbr, axis=0)                   # (K, NNp, Cp)

    # Pack the transposed conv weight: rows that hit x (even interleave slots) go to
    # [:Cp], rows that hit agg (odd slots) to [Cp:2Cp]; lane-dense zero padding.
    mm_dtype = jnp.bfloat16 if use_bf16_matmul else f32
    w_t = weight.astype(f32).T                                # (2C, Cout)
    w_cat = jnp.zeros((2 * Cp, Coutp), f32)
    w_cat = w_cat.at[:C, :Cout].set(w_t[0::2])
    w_cat = w_cat.at[Cp:Cp + C, :Cout].set(w_t[1::2])
    w_cat = w_cat.astype(mm_dtype)                            # cast once, not per tile
    b_pad = jnp.zeros((1, Coutp), f32).at[0, :Cout].set(bias.astype(f32))

    kernel = functools.partial(_fused_mrconv_kernel, k_neighbors=K,
                               use_bf16_matmul=use_bf16_matmul,
                               native_f16=native_f16)

    flops = 2 * NNp * (2 * Cp) * Coutp + 2 * NNp * K * Cp
    bytes_accessed = (x_pad.size * 4 + nbr_feat.size * 4
                      + w_cat.size * w_cat.dtype.itemsize
                      + b_pad.size * 4 + NNp * Coutp * 4)

    out = pl.pallas_call(
        kernel,
        out_shape=jax.ShapeDtypeStruct((NNp, Coutp), jnp.float32),
        grid_spec=pltpu.PrefetchScalarGridSpec(
            num_scalar_prefetch=0,
            grid=(num_tiles,),
            in_specs=[
                pl.BlockSpec((TM, Cp), lambda i: (i, 0)),          # x tile
                pl.BlockSpec((K, TM, Cp), lambda i: (0, i, 0)),    # gathered neighbors
                pl.BlockSpec((2 * Cp, Coutp), lambda i: (0, 0)),   # packed weight
                pl.BlockSpec((1, Coutp), lambda i: (0, 0)),        # bias
            ],
            out_specs=pl.BlockSpec((TM, Coutp), lambda i: (i, 0)),
        ),
        compiler_params=pltpu.CompilerParams(
            # independent node tiles -> shard across v7x's 2 TensorCores
            dimension_semantics=("parallel",),
            # per-step footprint is only a few MB now; 32 MiB is comfortable on
            # v5e/v6e and well under v7x's 64 MiB physical VMEM.
            vmem_limit_bytes=32 * 1024 * 1024,
        ),
        cost_estimate=pl.CostEstimate(flops=int(flops), transcendentals=0,
                                      bytes_accessed=int(bytes_accessed)),
    )(x_pad, nbr_feat, w_cat, b_pad)

    return out[:num_nodes, :Cout]


def graph_conv2d(x, edge_index, weight, bias, **kwargs):
    """x: (B, C, N, 1) f32; edge_index: (2, E) int32 over flat node index b*N+n.

    Assumes the dense gcn_lib graph structure: edge_index[0] == repeat(arange(B*N), K),
    i.e. exactly K valid edges per destination, grouped — so edge_index[1] reshapes into
    a (B*N, K) neighbor table and no scatter is needed.
    """
    # TODO(synk): ragged / padded (-1) edge lists would need a validity mask (-inf
    # before the max) to match the reference's empty-segment handling.
    B, C, N, _ = x.shape
    num_nodes = B * N
    E = edge_index.shape[1]
    assert E % num_nodes == 0, "expected a K-regular, destination-grouped edge list"
    K = E // num_nodes

    # NCHW -> node-major (matches the torch permute/reshape chain).
    x_nodes = jnp.transpose(x[..., 0], (0, 2, 1)).reshape(num_nodes, C)
    nbr_idx = edge_index[1].reshape(num_nodes, K)

    y = graph_conv2d_nodes(x_nodes, nbr_idx, weight, bias, **kwargs)   # (B*N, Cout)
    return jnp.transpose(y.reshape(B, N, -1), (0, 2, 1))[..., None]    # (B, Cout, N, 1)


# ------------------------------ pure-JAX reference -------------------------- #

def graph_conv2d_ref(x, edge_index, weight, bias):
    B, C, N, _ = x.shape
    xn = jnp.transpose(x[..., 0], (0, 2, 1)).reshape(B * N, C)
    diff = xn[edge_index[1]] - xn[edge_index[0]]
    agg = jax.ops.segment_max(diff, edge_index[0], num_segments=B * N)
    agg = jnp.where(jnp.isneginf(agg), 0.0, agg)
    agg = agg.astype(jnp.float16).astype(jnp.float32)
    feat = jnp.stack([xn, agg], axis=2).reshape(B * N, 2 * C)
    y = jnp.maximum(feat @ weight.T + bias[None, :], 0.0)
    return jnp.transpose(y.reshape(B, N, -1), (0, 2, 1))[..., None]


# ------------------------------------ main ---------------------------------- #

if __name__ == "__main__":
    B, C, N = 2, 4, 16
    Cout = 8
    K = 4                                    # neighbors per node
    num_nodes = B * N

    key = jax.random.PRNGKey(0)
    kx, ke, kw, kb = jax.random.split(key, 4)

    x = jax.random.normal(kx, (B, C, N, 1), dtype=jnp.float32)

    # edge_index[0] = destination nodes (every node appears K times, grouped),
    # edge_index[1] = random source neighbors.
    dst = jnp.repeat(jnp.arange(num_nodes, dtype=jnp.int32), K)
    src = jax.random.randint(ke, (num_nodes * K,), 0, num_nodes, dtype=jnp.int32)
    edge_index = jnp.stack([dst, src], axis=0)           # (2, E), E = 128

    # Conv2d(2*C, Cout, kernel_size=1, bias=True) parameters (deterministic init).
    weight = 0.1 * jax.random.normal(kw, (Cout, 2 * C), dtype=jnp.float32)
    bias = 0.1 * jax.random.normal(kb, (Cout,), dtype=jnp.float32)

    ref = graph_conv2d_ref(x, edge_index, weight, bias)

    # node_tile=16 so the small demo still exercises the tiled grid (grid=(2,)).
    # 1) f32 MXU path: exact check vs the f32 reference.
    out_f32 = graph_conv2d(x, edge_index, weight, bias, node_tile=16,
                           use_bf16_matmul=False)
    out_f32 = jax.block_until_ready(out_f32)
    assert out_f32.shape == (B, Cout, N, 1)
    assert jnp.allclose(out_f32, ref, atol=1e-5, rtol=1e-5), "f32 path mismatch vs reference"

    # 2) Default path (bf16 MXU operands, f32 accumulation) -> looser tolerance.
    out_bf16 = graph_conv2d(x, edge_index, weight, bias, node_tile=16)
    out_bf16 = jax.block_until_ready(out_bf16)
    assert out_bf16.shape == (B, Cout, N, 1)
    assert jnp.allclose(out_bf16, ref, atol=3e-2, rtol=3e-2), "bf16 path mismatch vs reference"

    print("KERNEL_OK")
</pallas_src>

<mosaic_0001>
module attributes {stable_mosaic.version = 11 : i64} {
  func.func @_fused_mrconv_kernel(%arg0: i32, %arg1: memref<16x128xf32, #tpu.memory_space<vmem>>, %arg2: memref<4x16x128xf32, #tpu.memory_space<vmem>>, %arg3: memref<256x128xf32, #tpu.memory_space<vmem>>, %arg4: memref<1x128xf32, #tpu.memory_space<vmem>>, %arg5: memref<16x128xf32, #tpu.memory_space<vmem>>) attributes {dimension_semantics = [#tpu.dimension_semantics<parallel>], iteration_bounds = array<i64: 2>, scalar_prefetch = 0 : i64, scratch_operands = 0 : i64, tpu.core_type = #tpu.core_type<tc>, window_params = [{transform_indices = @transform_0, window_bounds = array<i64: 16, 128>}, {transform_indices = @transform_1, window_bounds = array<i64: 4, 16, 128>}, {pipeline_mode = #tpu.pipeline_mode<synchronous>, transform_indices = @transform_2, window_bounds = array<i64: 256, 128>}, {pipeline_mode = #tpu.pipeline_mode<synchronous>, transform_indices = @transform_3, window_bounds = array<i64: 1, 128>}, {transform_indices = @transform_4, window_bounds = array<i64: 16, 128>}]} {
    %c0 = arith.constant 0 : index
    %c0_0 = arith.constant 0 : index
    %0 = vector.load %arg1[%c0, %c0_0] : memref<16x128xf32, #tpu.memory_space<vmem>>, vector<16x128xf32>
    %c0_1 = arith.constant 0 : index
    %c0_2 = arith.constant 0 : index
    %c0_3 = arith.constant 0 : index
    %1 = vector.load %arg2[%c0_1, %c0_2, %c0_3] : memref<4x16x128xf32, #tpu.memory_space<vmem>>, vector<1x16x128xf32>
    %2 = vector.shape_cast %1 : vector<1x16x128xf32> to vector<16x128xf32>
    %3 = arith.subf %2, %0 : vector<16x128xf32>
    %c1 = arith.constant 1 : index
    %c0_4 = arith.constant 0 : index
    %c0_5 = arith.constant 0 : index
    %4 = vector.load %arg2[%c1, %c0_4, %c0_5] : memref<4x16x128xf32, #tpu.memory_space<vmem>>, vector<1x16x128xf32>
    %5 = vector.shape_cast %4 : vector<1x16x128xf32> to vector<16x128xf32>
    %6 = arith.subf %5, %0 : vector<16x128xf32>
    %7 = arith.maximumf %3, %6 : vector<16x128xf32>
    %c2 = arith.constant 2 : index
    %c0_6 = arith.constant 0 : index
    %c0_7 = arith.constant 0 : index
    %8 = vector.load %arg2[%c2, %c0_6, %c0_7] : memref<4x16x128xf32, #tpu.memory_space<vmem>>, vector<1x16x128xf32>
    %9 = vector.shape_cast %8 : vector<1x16x128xf32> to vector<16x128xf32>
    %10 = arith.subf %9, %0 : vector<16x128xf32>
    %11 = arith.maximumf %7, %10 : vector<16x128xf32>
    %c3 = arith.constant 3 : index
    %c0_8 = arith.constant 0 : index
    %c0_9 = arith.constant 0 : index
    %12 = vector.load %arg2[%c3, %c0_8, %c0_9] : memref<4x16x128xf32, #tpu.memory_space<vmem>>, vector<1x16x128xf32>
    %13 = vector.shape_cast %12 : vector<1x16x128xf32> to vector<16x128xf32>
    %14 = arith.subf %13, %0 : vector<16x128xf32>
    %15 = arith.maximumf %11, %14 : vector<16x128xf32>
    %16 = math.absf %15 : vector<16x128xf32>
    %17 = tpu.bitcast %16 : vector<16x128xf32> -> vector<16x128xi32>
    %c4095_i32 = arith.constant 4095 : i32
    %18 = vector.broadcast %c4095_i32 : i32 to vector<16x128xi32>
    %19 = arith.addi %17, %18 : vector<16x128xi32>
    %c13_i32 = arith.constant 13 : i32
    %20 = vector.broadcast %c13_i32 : i32 to vector<16x128xi32>
    %21 = arith.shrsi %17, %20 : vector<16x128xi32>
    %c1_i32 = arith.constant 1 : i32
    %22 = vector.broadcast %c1_i32 : i32 to vector<16x128xi32>
    %23 = arith.andi %21, %22 : vector<16x128xi32>
    %24 = arith.addi %19, %23 : vector<16x128xi32>
    %c13_i32_10 = arith.constant 13 : i32
    %25 = vector.broadcast %c13_i32_10 : i32 to vector<16x128xi32>
    %26 = arith.shrsi %24, %25 : vector<16x128xi32>
    %c13_i32_11 = arith.constant 13 : i32
    %27 = vector.broadcast %c13_i32_11 : i32 to vector<16x128xi32>
    %28 = arith.shli %26, %27 : vector<16x128xi32>
    %29 = tpu.bitcast %28 : vector<16x128xi32> -> vector<16x128xf32>
    %c1199570944_i32 = arith.constant 1199570944 : i32
    %30 = vector.broadcast %c1199570944_i32 : i32 to vector<16x128xi32>
    %31 = arith.cmpi sge, %28, %30 : vector<16x128xi32>
    %cst = arith.constant 0x7F800000 : f32
    %32 = vector.broadcast %cst : f32 to vector<16x128xf32>
    %33 = arith.select %31, %32, %29 : vector<16x128xi1>, vector<16x128xf32>
    %cst_12 = arith.constant 0.000000e+00 : f32
    %34 = vector.broadcast %cst_12 : f32 to vector<16x128xf32>
    %35 = arith.cmpf olt, %15, %34 : vector<16x128xf32>
    %cst_13 = arith.constant 0.000000e+00 : f32
    %36 = vector.broadcast %cst_13 : f32 to vector<16x128xf32>
    %37 = arith.subf %36, %33 : vector<16x128xf32>
    %38 = arith.select %35, %37, %33 : vector<16x128xi1>, vector<16x128xf32>
    %cst_14 = arith.constant 0x4B800000 : f32
    %39 = vector.broadcast %cst_14 : f32 to vector<16x128xf32>
    %40 = arith.mulf %15, %39 : vector<16x128xf32>
    %cst_15 = arith.constant 0x4B400000 : f32
    %41 = vector.broadcast %cst_15 : f32 to vector<16x128xf32>
    %42 = arith.addf %40, %41 : vector<16x128xf32>
    %cst_16 = arith.constant 0x4B400000 : f32
    %43 = vector.broadcast %cst_16 : f32 to vector<16x128xf32>
    %44 = arith.subf %42, %43 : vector<16x128xf32>
    %cst_17 = arith.constant 5.96046448E-8 : f32
    %45 = vector.broadcast %cst_17 : f32 to vector<16x128xf32>
    %46 = arith.mulf %44, %45 : vector<16x128xf32>
    %cst_18 = arith.constant 6.10351563E-5 : f32
    %47 = vector.broadcast %cst_18 : f32 to vector<16x128xf32>
    %48 = arith.cmpf olt, %16, %47 : vector<16x128xf32>
    %49 = arith.select %48, %46, %38 : vector<16x128xi1>, vector<16x128xf32>
    %50 = arith.cmpf one, %15, %15 : vector<16x128xf32>
    %51 = arith.select %50, %15, %49 : vector<16x128xi1>, vector<16x128xf32>
    %52 = tpu.concatenate %0, %51 in 1 : vector<16x128xf32>, vector<16x128xf32> -> vector<16x256xf32>
    %c0_19 = arith.constant 0 : index
    %c0_20 = arith.constant 0 : index
    %53 = vector.load %arg3[%c0_19, %c0_20] : memref<256x128xf32, #tpu.memory_space<vmem>>, vector<256x128xf32>
    %cst_21 = arith.constant dense<0.000000e+00> : vector<16x128xf32>
    %54 = tpu.matmul %52, %53, %cst_21 {dimension_numbers = #tpu.dot_dimension_numbers<[1], [0], [0], [1], [0, 0, 1, 1], [], []>} : vector<16x256xf32>, vector<256x128xf32>, vector<16x128xf32> -> vector<16x128xf32>
    %c0_22 = arith.constant 0 : index
    %c0_23 = arith.constant 0 : index
    %55 = vector.load %arg4[%c0_22, %c0_23] : memref<1x128xf32, #tpu.memory_space<vmem>>, vector<1x128xf32>
    %56 = vector.broadcast %55 : vector<1x128xf32> to vector<16x128xf32>
    %57 = arith.addf %54, %56 : vector<16x128xf32>
    %cst_24 = arith.constant 0.000000e+00 : f32
    %58 = vector.broadcast %cst_24 : f32 to vector<16x128xf32>
    %59 = arith.maximumf %57, %58 : vector<16x128xf32>
    %c0_25 = arith.constant 0 : index
    %c0_26 = arith.constant 0 : index
    %60 = vector.load %arg5[%c0_25, %c0_26] : memref<16x128xf32, #tpu.memory_space<vmem>>, vector<16x128xf32>
    tpu.vector_store %arg5[%c0_25, %c0_26], %59 {strides = array<i32>} : memref<16x128xf32, #tpu.memory_space<vmem>>, vector<16x128xf32>,
    return
  }
  func.func @transform_0(%arg0: i32) -> (i32, i32) {
    %c0_i32 = arith.constant 0 : i32
    %c0_i32_0 = arith.constant 0 : i32
    return %arg0, %c0_i32 : i32, i32
  }
  func.func @transform_1(%arg0: i32) -> (i32, i32, i32) {
    %c0_i32 = arith.constant 0 : i32
    %c0_i32_0 = arith.constant 0 : i32
    %c0_i32_1 = arith.constant 0 : i32
    return %c0_i32, %arg0, %c0_i32_0 : i32, i32, i32
  }
  func.func @transform_2(%arg0: i32) -> (i32, i32) {
    %c0_i32 = arith.constant 0 : i32
    %c0_i32_0 = arith.constant 0 : i32
    %c0_i32_1 = arith.constant 0 : i32
    return %c0_i32, %c0_i32_0 : i32, i32
  }
  func.func @transform_3(%arg0: i32) -> (i32, i32) {
    %c0_i32 = arith.constant 0 : i32
    %c0_i32_0 = arith.constant 0 : i32
    %c0_i32_1 = arith.constant 0 : i32
    return %c0_i32, %c0_i32_0 : i32, i32
  }
  func.func @transform_4(%arg0: i32) -> (i32, i32) {
    %c0_i32 = arith.constant 0 : i32
    %c0_i32_0 = arith.constant 0 : i32
    return %arg0, %c0_i32 : i32, i32
  }
}

</mosaic_0001>

<bundles_post_ra>
// kernel: tpu_custom_call.1
= control target key start
LH: loop header
LB: loop body
LE: loop exit
PB: predicated region body
PF: predicated region fallthrough
CT: control target
= control target key end

     0   :  { %9 = vsyncpa [#allocation3], 0  ;;  %s1209_s0 = inlined_call_operand.hbm [shape: f32[32,128], index: 0, kind: input, shape index: {}]   ;;  %s1210_s1 = inlined_call_operand.hbm [shape: f32[4,32,128], index: 1, kind: input, shape index: {}]   ;;  %s1211_s2 = inlined_call_operand.hbm [shape: f32[256,128], index: 2, kind: input, shape index: {}]   ;;  %s1212_s3 = inlined_call_operand.vmem [shape: f32[1,128], index: 3, kind: input, shape index: {}]   ;;  %s1213_s4 = inlined_call_operand.hbm [shape: f32[32,128], index: 4, kind: output, shape index: {}]  }
   0x1   :  { %11 = vsyncpa [#allocation3 + $0x1], 0 }
   0x2   :  { %12 = vsyncpa [#allocation6], 0 }
   0x3   :  { %14 = vsyncpa [#allocation6 + $0x1], 0 }
   0x4   :  { %15 = vsyncpa [#allocation4], 0 }
   0x5   :  { %17 = vsyncpa [#allocation4 + $0x1], 0  ;;  %s949_s15 = smov 0   ;;  %s951_s16 = smov 0  }
   0x6   :  { %s953_s17 = smov 0   ;;  %s955_s18 = smov 0  }
   0x7 LB: > { %s970_s19 = sadd.s32 4294967295, %s907_s18   ;;  %s606_s20 = sadd.s32 4294967294, %s907_s18   ;;  %s907_s18 = sphi %s955_s18, %s1232_s18   ;;  %s903_s17 = sphi %s953_s17, %s1231_s17   ;;  %s899_s16 = sphi %s951_s16, %s1230_s16   ;;  %s895_s15 = sphi %s949_s15, %s1229_s15  }
   0x8   : > { %s974_s21 = sadd.s32 1, %s907_s18   ;;  %s30_s22 = sadd.s32 1, %s903_s17 }
   0x9   : > { %s27_s23 = ssub.s32 %s907_s18, %s974_s21  ;;  %p37_p0 = scmp.ne.s32.totalorder %s903_s17, %s899_s16 }
   0xa   : > { %p28_p1 = scmp.eq.s32.totalorder %s27_s23, 0  ;;  %p38_p2 = scmp.eq.s32.totalorder %s907_s18, 0 }
   0xb   : > { %p43_p3 = scmp.ne.s32.totalorder %s899_s16, %s895_s15  ;;  %p1217_p4 = scmp.eq.s32.totalorder %s970_s19, 0 }
   0xc   : > { %s986_s24 = scalar_select %p28_p1, %s903_s17, %s30_s22  }
   0xd   : > { %p988_p5 = por %p38_p2, %p37_p0  ;;  %p994_p6 = por %p1217_p4, %p43_p3 }
   0xe   : > { %p135_p7 = scmp.eq.s32.totalorder %s970_s19, 1  ;;  %p141_p8 = scmp.eq.s32.totalorder %s606_s20, 1 }
   0xf   : > { %s1219_s26 = scalar_select %p994_p6, 1, 0 }
  0x10   : > { %p607_p9 = scmp.ge.s32.totalorder %s907_s18, 1  ;;  %p148_p10 = scmp.lt.s32.totalorder %s907_s18, 3 }
  0x11   : > { %p1001_p11 = por %p135_p7, %p37_p0  ;;  %p1005_p12 = por %p141_p8, %p43_p3 }
  0x12   : > { %p1009_p13 = pnand %p607_p9, %p148_p10  ;;  %s909_s30 = smov [#allocation7]  }
  0x13   : > { %s1220_s27 = scalar_select %p1001_p11, 1, 0 }
  0x14   : > { %s1221_s28 = scalar_select %p1005_p12, 1, 0 }
  0x15   : > { %p727_p1 = pneg %p1009_p13  ;;  %s160_s5 = sshll.u32 %s909_s30, 4  ;;  %s161_s5 = int_to_ptr.vmem [resolvable:$true] %s160_s5 }
  0x16   : > { %s794_s6 = scalar_lea.vmem %s161_s5, 4096  ;;  %p802_p8 = scmp.lt.s32.totalorder %s161_s5, %s161_s5 }
  0x17   : > { %p728_p2 = pnand %p727_p1, %p1217_p4  ;;  %p795_p7 = scmp.ne.s32.totalorder %s161_s5, %s794_s6 }
  0x18   : > { %p803_p6 = scmp.lt.s32.totalorder %s794_s6, %s794_s6 }
  0x19   : > { %p785_p0 = pneg %p728_p2 }
  0x1a   : > { %p804_p12 = por %p803_p6, %p802_p8 }
  0x1b   : > { %p797_p11 = pnand %p795_p7, %p785_p0 }
  0x1d   : > { %p798_p3 = pneg %p797_p11 }
  0x1f   : > { %p805_p9 = pnand %p804_p12, %p798_p3 }
  0x21   : > { %808 = shalt.err (!%p805_p9)
}
  0x22   : > { %s910_s7 = smov 128   ;;  %s911_s8 = smov 8  }
  0x23   : > { %730 = dma.hbm_to_vmem [thread:$0]  (!%p728_p2), %s1211_s2, 4096, %s161_s5, [#allocation6], %s910_s7, %s910_s7, %s911_s8  }
  0x24   : > { %p1216_p10 = scmp.ge.s32.totalorder %s907_s18, 2 }
  0x25   : > { %s1024_s11 = sand.u32 (!%p1216_p10), 1, %s903_s17   ;;  %s637_s12 = sshll.u32 (!%p1216_p10), %s907_s18, 8 }
  0x26   : > { %173 = sbr.rel (%p1216_p10) target bundleno = 76 (0x4c), region = 24  ;;  %s610_s13 = sshll.u32 (!%p1216_p10), %s1024_s11, 4 }
  0x27   : > { %s1033_s22 = scalar_lea.hbm (!%p1216_p10), %s1209_s0, %s637_s12  ;;  %s181_s23 = scalar_lea.vmem (!%p1216_p10), [#allocation2], %s610_s13 }
  0x28   : > { %s188_s30 = sshll.u32 (!%p1216_p10), %s181_s23, 4  ;;  %s178_s5 = scalar_lea.sflag (!%p1216_p10), [#allocation3], %s1024_s11  ;;  %s1035_s30 = int_to_ptr.vmem [resolvable:$true] %s188_s30 }
  0x29   : > { %s809_s6 = scalar_lea.hbm (!%p1216_p10), %s1033_s22, 256  ;;  %s813_s9 = scalar_lea.hbm (!%p1216_p10), %s1209_s0, 512 }
  0x2a   : > { %p810_p6 = scmp.ne.s32.totalorder (!%p1216_p10), %s1033_s22, %s809_s6  ;;  %p814_p1 = scmp.lt.s32.totalorder (!%p1216_p10), %s1033_s22, %s1209_s0 }
  0x2b   : > { %p815_p2 = scmp.lt.s32.totalorder %s813_s9, %s809_s6 }
  0x2c   : > { %p811_p11 = pnand %p810_p6, %p988_p5 }
  0x2d   : > { %p816_p0 = por %p815_p2, %p814_p1 }
  0x2e   : > { %p812_p12 = pneg %p811_p11 }
  0x30   : > { %p817_p7 = pnand %p816_p0, %p812_p12 }
  0x32   : > { %820 = shalt.err (!%p817_p7)
}
  0x33   : > { %s821_s13 = scalar_lea.vmem %s1035_s30, 256  ;;  %s912_s20 = smov [#allocation2]  }
  0x34   : > { %p822_p3 = scmp.ne.s32.totalorder %s1035_s30, %s821_s13  ;;  %s825_s23 = sshll.u32 %s912_s20, 4  ;;  %s826_s23 = int_to_ptr.vmem [resolvable:$false] %s825_s23 }
  0x35   : > { %s827_s7 = scalar_lea.vmem %s826_s23, 512  ;;  %p828_p6 = scmp.lt.s32.totalorder %s1035_s30, %s826_s23 }
  0x36   : > { %p823_p8 = pnand %p822_p3, %p988_p5  ;;  %p829_p11 = scmp.lt.s32.totalorder %s827_s7, %s821_s13 }
  0x38   : > { %p824_p9 = pneg %p823_p8  ;;  %p830_p10 = por %p829_p11, %p828_p6 }
  0x3a   : > { %p831_p4 = pnand %p830_p10, %p824_p9 }
  0x3c   : > { %834 = shalt.err (!%p831_p4)
}
  0x3d   : > { %s913_s6 = smov 128   ;;  %s914_s8 = smov 8  }
  0x3e   : > { %712 = dma.hbm_to_vmem [thread:$0]  (%p988_p5), %s1033_s22, 256, %s1035_s30, %s178_s5, %s913_s6, %s913_s6, %s914_s8  }
  0x3f   : > { %s198_s9 = sand.u32 1, %s907_s18   ;;  %s613_s10 = sshll.u32 %s1024_s11, 6 }
  0x40   : > { %s208_s20 = scalar_lea.hbm %s1210_s1, %s637_s12  ;;  %s202_s22 = scalar_lea.vmem [#allocation5], %s613_s10 }
  0x41   : > { %s713_s23 = scalar_select %p988_p5, [#allocation0], [#allocation11] }
  0x42   : > { %s221_s30 = sshll.u32 %s202_s22, 4  ;;  %s915_s7 = smov 512   ;;  %s222_s30 = int_to_ptr.vmem [resolvable:$true] %s221_s30 }
  0x43   : > { %s213_s5 = sld [smem:[%s713_s23]]   ;;  %s916_s6 = smov 256  }
  0x44   : > { %714 = sst [smem:[#allocation10]] (%p988_p5), %s915_s7  ;;  %s917_s8 = smov 2  }
  0x45   : > { %715 = sst [smem:[#allocation10 + $0x1]] (%p988_p5), %s916_s6  ;;  %s918_s11 = smov 128  }
  0x46   : > { %716 = sst [smem:[#allocation10 + $0x2]] (%p988_p5), %s917_s8  ;;  %s919_s10 = smov 8  }
  0x47   : > { %717 = sst [smem:[#allocation10 + $0x3]] (%p988_p5), %s918_s11  ;;  %s199_s13 = scalar_lea.sflag [#allocation6], %s198_s9 }
  0x48   : > { %718 = sst [smem:[#allocation10 + $0x4]] (%p988_p5), %s918_s11  ;;  %s920_s23 = smov 131072  }
  0x49   : > { %s616_s12 = sshll.u32 %s213_s5, 26  ;;  %719 = sst [smem:[#allocation10 + $0x5]] (%p988_p5), %s919_s10 }
  0x4a   : > { %s617_s14 = sadd.s32 134217728, %s616_s12 }
  0x4b   : > { %720 = dma.general (%p988_p5), %s208_s20, 1024, %s222_s30, %s199_s13, %s920_s23, [#allocation10], %s617_s14, 0  }
  0x4c PF: > { %246 = sbr.rel (%p1009_p13) target bundleno = 339 (0x153), region = 36  ;;  %s1086_s22 = sand.u32 (!%p1009_p13), 1, %s899_s16  }
  0x4d   : > { %s619_s5 = sshll.u32 (!%p1009_p13), %s1086_s22, 4  ;;  %s249_s7 = scalar_lea.sflag (!%p1009_p13), [#allocation3], %s1086_s22 }
  0x4e   : > { %s1092_s6 = scalar_lea.vmem (!%p1009_p13), [#allocation2], %s619_s5  ;;  %p1223_p4 = scmp.ne.s32.totalorder (!%p1009_p13), %s1219_s26, 0 }
  0x51   : > { %878 = dma.done.wait (%p1223_p4), %s249_s7, 256  }
  0x52   : > { %880 = vsyncadd (%p1223_p4), %s249_s7, 4294967040  ;;  %s257_s25 = sand.u32 1, %s970_s19   ;;  %s620_s29 = sshll.u32 %s1086_s22, 6 }
  0x53   : > { %s258_s9 = scalar_lea.sflag [#allocation6], %s257_s25  ;;  %s1100_s20 = scalar_lea.vmem [#allocation5], %s620_s29 }
  0x54   : > { %882 = dma.done.wait (%p1223_p4), %s258_s9, 1024  }
  0x55   : > { %884 = vsyncadd (%p1223_p4), %s258_s9, 4294966272  ;;  %p1224_p5 = scmp.eq.s32.totalorder %s970_s19, 0 }
  0x57   : > { %886 = dma.done.wait (%p1224_p5), [#allocation6], 4096   ;;  %p1225_p13 = pmov %p1224_p5 }
  0x58   : > { %v400_v0 = vld [vmem:[#allocation7 + $0xf8] sm:$0xff]  ;;  %v399_v2 = vld [vmem:[#allocation7 + $0xf0] sm:$0xff]  ;;  %v398_v4 = vld [vmem:[#allocation7 + $0xe8] sm:$0xff]  ;;  %s294_s8 = scalar_lea.vmem [#allocation8], %s619_s5  ;;  %s639_s12 = sshll.u32 %s970_s19, 8 }
  0x59   : > { %888 = vsyncadd (%p1225_p13), [#allocation6], 4294963200  ;;  %v384_v1 = vld [vmem:[#allocation7 + $0x78] sm:$0xff]  ;;  %640 = vmatprep.subr.mxu0 %v400_v0  ;;  %678 = vmatprep.subr.mxu1 %v400_v0  ;;  %v383_v3 = vld [vmem:[#allocation7 + $0x70] sm:$0xff]  ;;  %s501_s11 = sshll.u32 %s294_s8, 4  ;;  %s1166_s13 = scalar_lea.hbm %s1213_s4, %s639_s12  ;;  %s1161_s11 = int_to_ptr.vmem [resolvable:$true] %s501_s11 }
  0x5a   : > { %641 = vmatpush3.msra.mxu0 %v384_v1  ;;  %694 = vmatpush3.msra.mxu1 %v384_v1  ;;  %v382_v5 = vld [vmem:[#allocation7 + $0x68] sm:$0xff]  ;;  %v397_v6 = vld [vmem:[#allocation7 + $0xe0] sm:$0xff]  ;;  %v396_v8 = vld [vmem:[#allocation7 + $0xd8] sm:$0xff]  ;;  %s488_s23 = scalar_lea.sflag [#allocation4], %s1086_s22  ;;  %s835_s5 = scalar_lea.vmem %s1161_s11, 256 }
  0x5b   : > { %642 = vmatprep.subr.mxu0 %v399_v2  ;;  %679 = vmatprep.subr.mxu1 %v399_v2  ;;  %v381_v7 = vld [vmem:[#allocation7 + $0x60] sm:$0xff]  ;;  %v380_v9 = vld [vmem:[#allocation7 + $0x58] sm:$0xff]  ;;  %v395_v10 = vld [vmem:[#allocation7 + $0xd0] sm:$0xff]  ;;  %p836_p10 = scmp.ne.s32.totalorder %s1161_s11, %s835_s5  ;;  %p1226_p12 = scmp.ne.s32.totalorder %s1220_s27, 0 }
  0x5c   : > { %643 = vmatpush3.msra.mxu0 %v383_v3  ;;  %695 = vmatpush3.msra.mxu1 %v383_v3  ;;  %v379_v11 = vld [vmem:[#allocation7 + $0x50] sm:$0xff]  ;;  %v394_v12 = vld [vmem:[#allocation7 + $0xc8] sm:$0xff]  ;;  %v393_v14 = vld [vmem:[#allocation7 + $0xc0] sm:$0xff]  ;;  %s921_s19 = smov [#allocation8]  }
  0x5d   : > { %644 = vmatprep.subr.mxu0 %v398_v4  ;;  %680 = vmatprep.subr.mxu1 %v398_v4  ;;  %v378_v13 = vld [vmem:[#allocation7 + $0x48] sm:$0xff]  ;;  %v1111_v15 = vld [vmem:[%s1092_s6] sm:$0xff]  ;;  %v624_v28 = vld [vmem:[%s1100_s20 + $0x18] sm:$0xff]  ;;  %p837_p1 = pnand %p836_p10, %p1226_p12  ;;  %s839_s7 = sshll.u32 %s921_s19, 4  ;;  %s840_s7 = int_to_ptr.vmem [resolvable:$false] %s839_s7 }
  0x5e   : > { %645 = vmatpush3.msra.mxu0 %v382_v5  ;;  %696 = vmatpush3.msra.mxu1 %v382_v5  ;;  %v300_v16 = vld [vmem:[%s1100_s20] sm:$0xff]  ;;  %v623_v17 = vld [vmem:[%s1100_s20 + $0x10] sm:$0xff]  ;;  %v1121_v23 = vld [vmem:[%s1092_s6 + $0x8] sm:$0xff]  ;;  %s841_s6 = scalar_lea.vmem %s840_s7, 512  ;;  %p842_p0 = scmp.lt.s32.totalorder %s1161_s11, %s840_s7 }
  0x5f   : > { %646 = vmatprep.subr.mxu0 %v397_v6  ;;  %681 = vmatprep.subr.mxu1 %v397_v6  ;;  %v625_v18 = vld [vmem:[%s1100_s20 + $0x20] sm:$0xff]  ;;  %v302_v19 = vsub.f32 %v300_v16, %v1111_v15  ;;  %v307_v20 = vsub.f32 %v623_v17, %v1111_v15  ;;  %v627_v22 = vld [vmem:[%s1100_s20 + $0x30] sm:$0xff]  ;;  %v301_v24 = vld [vmem:[%s1100_s20 + $0x8] sm:$0xff]  ;;  %v308_v32 = vsub.f32 %v624_v28, %v1121_v23  ;;  %p838_p2 = pneg %p837_p1  ;;  %p843_p7 = scmp.lt.s32.totalorder %s841_s6, %s835_s5 }
  0x60   : > { %647 = vmatpush3.msra.mxu0 %v381_v7  ;;  %697 = vmatpush3.msra.mxu1 %v381_v7  ;;  %v314_v21 = vsub.f32 %v625_v18, %v1111_v15  ;;  %v377_v25 = vld [vmem:[#allocation7 + $0x40] sm:$0xff]  ;;  %v321_v26 = vsub.f32 %v627_v22, %v1111_v15  ;;  %v303_v27 = vsub.f32 %v301_v24, %v1121_v23  ;;  %v626_v29 = vld [vmem:[%s1100_s20 + $0x28] sm:$0xff]  ;;  %v392_v30 = vld [vmem:[#allocation7 + $0xb8] sm:$0xff] }
  0x61   : > { %648 = vmatprep.subr.mxu0 %v396_v8  ;;  %682 = vmatprep.subr.mxu1 %v396_v8  ;;  %v309_v31 = vmax.f32 %v302_v19, %v307_v20  ;;  %v315_v33 = vsub.f32 %v626_v29, %v1121_v23  ;;  %v628_v34 = vld [vmem:[%s1100_s20 + $0x38] sm:$0xff]  ;;  %v391_v36 = vld [vmem:[#allocation7 + $0xb0] sm:$0xff]  ;;  %v390_v41 = vld [vmem:[#allocation7 + $0xa8] sm:$0xff]  ;;  %p844_p3 = por %p843_p7, %p842_p0 }
  0x62   : > { %649 = vmatpush3.msra.mxu0 %v380_v9  ;;  %698 = vmatpush3.msra.mxu1 %v380_v9  ;;  %v376_v35 = vld [vmem:[#allocation7 + $0x38] sm:$0xff]  ;;  %v310_v38 = vmax.f32 %v303_v27, %v308_v32  ;;  %v375_v39 = vld [vmem:[#allocation7 + $0x30] sm:$0xff]  ;;  %v322_v40 = vsub.f32 %v628_v34, %v1121_v23  ;;  %v374_v44 = vld [vmem:[#allocation7 + $0x28] sm:$0xff] }
  0x63   : > { %650 = vmatprep.subr.mxu0 %v395_v10  ;;  %683 = vmatprep.subr.mxu1 %v395_v10  ;;  %v316_v37 = vmax.f32 %v309_v31, %v314_v21  ;;  %v389_v45 = vld [vmem:[#allocation7 + $0xa0] sm:$0xff]  ;;  %v388_v50 = vld [vmem:[#allocation7 + $0x98] sm:$0xff]  ;;  %v387_v55 = vld [vmem:[#allocation7 + $0x90] sm:$0xff]  ;;  %p845_p8 = pnand %p844_p3, %p838_p2 }
  0x64   : > { %651 = vmatpush3.msra.mxu0 %v379_v11  ;;  %699 = vmatpush3.msra.mxu1 %v379_v11  ;;  %v317_v43 = vmax.f32 %v310_v38, %v315_v33  ;;  %v373_v47 = vld [vmem:[#allocation7 + $0x20] sm:$0xff]  ;;  %v372_v53 = vld [vmem:[#allocation7 + $0x18] sm:$0xff]  ;;  %v371_v58 = vld [vmem:[#allocation7 + $0x10] sm:$0xff] }
  0x65   : > { %652 = vmatprep.subr.mxu0 %v394_v12  ;;  %684 = vmatprep.subr.mxu1 %v394_v12  ;;  %v1132_v42 = vmax.f32 %v316_v37, %v321_v26  ;;  %v386_v62 = vld [vmem:[#allocation7 + $0x88] sm:$0xff]  ;;  %v385_v2 = vld [vmem:[#allocation7 + $0x80] sm:$0xff] }
  0x66   : > { %653 = vmatpush3.msra.mxu0 %v378_v13  ;;  %700 = vmatpush3.msra.mxu1 %v378_v13  ;;  %v1138_v49 = vmax.f32 %v317_v43, %v322_v40  ;;  %v370_v0 = vld [vmem:[#allocation7 + $0x8] sm:$0xff]  ;;  %v369_v5 = vld [vmem:[#allocation7] sm:$0xff] }
  0x67   : > { %654 = vmatprep.subr.mxu0 %v393_v14  ;;  %685 = vmatprep.subr.mxu1 %v393_v14  ;;  %v1135_v46 = vand.u32 2147483647, %v1132_v42  ;;  %v353_v48 = vmul.f32 16777216.0, %v1132_v42  ;;  %vm347_vm1 = vcmp.lt.f32.partialorder %v1132_v42, 0.0  ;;  %vm365_vm3 = vcmp.ne.f32.partialorder %v1132_v42, %v1132_v42  ;;  %v631_v27 = vld [vmem:[%s1212_s3] ss:$0 sm:$0xff] }
  0x68   : > { %655 = vmatpush3.msra.mxu0 %v377_v25  ;;  %701 = vmatpush3.msra.mxu1 %v377_v25  ;;  %v326_v54 = vand.u32 2147483647, %v1138_v49  ;;  %v354_v57 = vmul.f32 16777216.0, %v1138_v49  ;;  %vm348_vm5 = vcmp.lt.f32.partialorder %v1138_v49, 0.0  ;;  %vm366_vm7 = vcmp.ne.f32.partialorder %v1138_v49, %v1138_v49 }
  0x69   : > { %656 = vmatprep.subr.mxu0 %v392_v30  ;;  %686 = vmatprep.subr.mxu1 %v392_v30  ;;  %v329_v51 = vadd.s32 4095, %v1135_v46  ;;  %v331_v52 = vshra.s32 %v1135_v46, 13  ;;  %v355_v59 = vadd.f32 12582912.0, %v353_v48  ;;  %vm361_vm2 = vcmp.lt.f32.partialorder %v1135_v46, 6.1035156e-05 }
  0x6a   : > { %657 = vmatpush3.msra.mxu0 %v376_v35  ;;  %702 = vmatpush3.msra.mxu1 %v376_v35  ;;  %v330_v60 = vadd.s32 4095, %v326_v54  ;;  %v332_v61 = vshra.s32 %v326_v54, 13  ;;  %v356_v4 = vadd.f32 12582912.0, %v354_v57  ;;  %vm362_vm6 = vcmp.lt.f32.partialorder %v326_v54, 6.1035156e-05 }
  0x6b   : > { %658 = vmatprep.subr.mxu0 %v391_v36  ;;  %687 = vmatprep.subr.mxu1 %v391_v36  ;;  %v333_v56 = vand.u32 1, %v331_v52  ;;  %v629_v6 = vadd.f32 -12582912.0, %v355_v59 }
  0x6c   : > { %659 = vmatpush3.msra.mxu0 %v375_v39  ;;  %703 = vmatpush3.msra.mxu1 %v375_v39  ;;  %v334_v1 = vand.u32 1, %v332_v61  ;;  %v630_v10 = vadd.f32 -12582912.0, %v356_v4 }
  0x6d   : > { %660 = vmatprep.subr.mxu0 %v390_v41  ;;  %688 = vmatprep.subr.mxu1 %v390_v41  ;;  %v335_v63 = vadd.s32 %v333_v56, %v329_v51  ;;  %v359_v12 = vmul.f32 5.9604645e-08, %v629_v6 }
  0x6e   : > { %661 = vmatpush3.msra.mxu0 %v374_v44  ;;  %704 = vmatpush3.msra.mxu1 %v374_v44  ;;  %v336_v7 = vadd.s32 %v334_v1, %v330_v60  ;;  %v360_v18 = vmul.f32 5.9604645e-08, %v630_v10 }
  0x6f   : > { %662 = vmatprep.subr.mxu0 %v389_v45  ;;  %689 = vmatprep.subr.mxu1 %v389_v45  ;;  %v337_v3 = vshra.s32 %v335_v63, 13 }
  0x70   : > { %663 = vmatpush3.msra.mxu0 %v373_v47  ;;  %705 = vmatpush3.msra.mxu1 %v373_v47  ;;  %v338_v9 = vshra.s32 %v336_v7, 13 }
  0x71   : > { %664 = vmatprep.subr.mxu0 %v388_v50  ;;  %690 = vmatprep.subr.mxu1 %v388_v50  ;;  %v339_v8 = vshll.u32 %v337_v3, 13 }
  0x72   : > { %665 = vmatpush3.msra.mxu0 %v372_v53  ;;  %706 = vmatpush3.msra.mxu1 %v372_v53  ;;  %v340_v13 = vshll.u32 %v338_v9, 13 }
  0x73   : > { %666 = vmatprep.subr.mxu0 %v387_v55  ;;  %691 = vmatprep.subr.mxu1 %v387_v55  ;;  %vm343_vm0 = vcmp.ge.s32.totalorder %v339_v8, 1199570944 }
  0x74   : > { %667 = vmatpush3.msra.mxu0 %v371_v58  ;;  %707 = vmatpush3.msra.mxu1 %v371_v58  ;;  %v345_v11 = vsel %vm343_vm0, inf, %v339_v8  ;;  %vm344_vm4 = vcmp.ge.s32.totalorder %v340_v13, 1199570944 }
  0x75   : > { %668 = vmatprep.subr.mxu0 %v386_v62  ;;  %692 = vmatprep.subr.mxu1 %v386_v62  ;;  %v349_v14 = vsub.f32 0.0, %v345_v11  ;;  %v346_v17 = vsel %vm344_vm4, inf, %v340_v13 }
  0x76   : > { %669 = vmatpush3.msra.mxu0 %v370_v0  ;;  %708 = vmatpush3.msra.mxu1 %v370_v0  ;;  %v350_v20 = vsub.f32 0.0, %v346_v17 }
  0x77   : > { %670 = vmatprep.subr.mxu0 %v385_v2  ;;  %693 = vmatprep.subr.mxu1 %v385_v2  ;;  %v351_v16 = vsel %vm347_vm1, %v349_v14, %v345_v11 }
  0x78   : > { %671 = vmatpush3.msra.mxu0 %v369_v5  ;;  %709 = vmatpush3.msra.mxu1 %v369_v5  ;;  %v363_v19 = vsel %vm361_vm2, %v359_v12, %v351_v16  ;;  %v352_v22 = vsel %vm348_vm5, %v350_v20, %v346_v17 }
  0x79   : > { %v367_v21 = vsel %vm365_vm3, %v1132_v42, %v363_v19  ;;  %v364_v24 = vsel %vm362_vm6, %v360_v18, %v352_v22 }
  0x7a   : > { %472 = vmatprep.mubr.f32.mxu0 %v367_v21  ;;  %v368_v25 = vsel %vm366_vm7, %v1138_v49, %v364_v24 }
  0x7b   : > { %473 = vmatmul.mubr.f32.vlgmr.msra.gmra.mxu0 %v1111_v15  ;;  %477 = vmatprep.mubr.f32.mxu1 %v368_v25 }
  0x7c   : > { %478 = vmatmul.mubr.f32.vlgmr.msra.gmra.mxu1 %v1121_v23 }
 0x13b   : > { %v672_v26 = vpop.f32.mrf.mxu0 }
 0x13c   : > { %v675_v29 = vpop.f32.mrf.mxu1 }
 0x13d   : > { %v673_v28 = vpop.f32.mrf.mxu0 }
 0x13e   : > { %v674_v30 = vadd.f32 %v673_v28, %v672_v26  ;;  %v676_v15 = vpop.f32.mrf.mxu1 }
 0x13f   : > { %v677_v32 = vadd.f32 %v676_v15, %v675_v29 }
 0x140   : > { %v475_v31 = vadd.f32 %v674_v30, %v631_v27 }
 0x141   : > { %v480_v23 = vadd.f32 %v677_v32, %v631_v27 }
 0x142   : > { %v483_v33 = vmax.f32 %v475_v31, 0.0 }
 0x143   : > { %v484_v34 = vmax.f32 %v480_v23, 0.0 }
 0x144   : > { %485 = vst [vmem:[%s294_s8] sm:$0xff] %v483_v33 }
 0x145   : > { %486 = vst [vmem:[%s294_s8 + $0x8] sm:$0xff] %v484_v34 }
 0x146   : > { %848 = shalt.err (!%p845_p8)
}
 0x147   : > { %s849_s25 = scalar_lea.hbm %s1166_s13, 256  ;;  %s853_s20 = scalar_lea.hbm %s1213_s4, 512 }
 0x148   : > { %p850_p9 = scmp.ne.s32.totalorder %s1166_s13, %s849_s25  ;;  %p854_p4 = scmp.lt.s32.totalorder %s1166_s13, %s1213_s4 }
 0x149   : > { %p855_p5 = scmp.lt.s32.totalorder %s853_s20, %s849_s25 }
 0x14a   : > { %p851_p6 = pnand %p850_p9, %p1226_p12 }
 0x14b   : > { %p856_p13 = por %p855_p5, %p854_p4 }
 0x14c   : > { %p852_p11 = pneg %p851_p6 }
 0x14e   : > { %p857_p10 = pnand %p856_p13, %p852_p11 }
 0x150   : > { %860 = shalt.err (!%p857_p10)
}
 0x151   : > { %s922_s8 = smov 128   ;;  %s923_s12 = smov 8  }
 0x152   : > { %725 = dma.vmem_to_hbm [thread:$0]  (%p1226_p12), %s1161_s11, 256, %s1166_s13, %s488_s23, %s922_s8, %s922_s8, %s923_s12  }
 0x153 PF: > { %s516_s10 = sand.u32 1, %s895_s15   ;;  %p1227_p1 = scmp.ne.s32.totalorder %s1221_s28, 0 }
 0x154   : > { %p1228_p2 = scmp.ge.s32.totalorder %s907_s18, 2  ;;  %s517_s14 = scalar_lea.sflag [#allocation4], %s516_s10 }
 0x156   : > { %p732_p0 = pnand %p1228_p2, %p1227_p1 }
 0x158   : > { %p733_p7 = pneg %p732_p0 }
 0x15a   : > { %890 = dma.done.wait (%p733_p7), %s517_s14, 256  }
 0x15b   : > { %892 = vsyncadd (%p733_p7), %s517_s14, 4294967040  ;;  %p20_p3 = scmp.ge.s32.totalorder %s974_s21, 4   ;;  %s1229_s15 = smov %s899_s16 }
 0x15c   : > { %s1230_s16 = smov %s903_s17  ;;  %s1231_s17 = smov %s986_s24 }
 0x15d   : > { %s1232_s18 = smov %s974_s21  ;;  %22 = sbr.rel (!%p20_p3) target bundleno = 7 (0x7), region = 106 }
 0x162   :  { %522 = vsyncpa [#allocation3], 1 }
 0x163   :  { %524 = vsyncpa [#allocation3 + $0x1], 1 }
 0x164   :  { %525 = vsyncpa [#allocation6], 1 }
 0x165   :  { %527 = vsyncpa [#allocation6 + $0x1], 1 }
 0x166   :  { %528 = vsyncpa [#allocation4], 1 }
 0x167   :  { %530 = vsyncpa [#allocation4 + $0x1], 1 }

</bundles_post_ra>
